<compile_context>
chip_gen: v5e
topology: v5e:2x2
jax: 0.10.0
libtpu: 0.0.40
codegen_flags: <defaults>
</compile_context>

<pallas_src>
import functools

import jax
import jax.numpy as jnp
from jax.experimental import pallas as pl
from jax.experimental.pallas import tpu as pltpu


def _generator_kernel(x_ref, m_ref, bsum_ref, out_ref):
    """One batch tile per grid step.

    x_ref   : VMEM (NB, Cin*H*W)     flattened inputs
    m_ref   : VMEM (Cin*H*W, OH*OW)  dense transposed-conv map (pad + out-channel sum folded in)
    bsum_ref: SMEM (1,)              out-channel-summed bias
    out_ref : VMEM (NB, OH*OW)       lane-dense, clamped output
    """
    y = jnp.dot(
        x_ref[...], m_ref[...],
        preferred_element_type=jnp.float32,
        precision=jax.lax.Precision.HIGHEST,
    )
    out_ref[...] = jnp.clip(y + bsum_ref[0], 0.0, 1.0)


def build_generator_params(w, b, H, W):
    """Fold flip + zero-padding + out-channel sum of a stride-1, padding-0
    ConvTranspose2d into a dense matrix M (Cin*H*W, OH*OW) and a bias sum.

    out_sum[n, oh, ow] = sum_{ci,h,w} x[n,ci,h,w] * w_sum[ci, oh-h, ow-w] + b_sum
    with w_sum = sum_d w[ci, d] and valid taps 0 <= oh-h < K, 0 <= ow-w < K.
    Call once per weight update (hoisted out of the per-forward path).
    """
    Cin, Cout, K, _ = w.shape
    OH, OW = H + K - 1, W + K - 1
    w_sum = jnp.sum(w, axis=1).astype(jnp.float32)                      # (Cin, K, K)

    p = jnp.arange(OH)[None, :] - jnp.arange(H)[:, None]                # (H, OH)
    q = jnp.arange(OW)[None, :] - jnp.arange(W)[:, None]                # (W, OW)
    p_ok = (p >= 0) & (p < K)
    q_ok = (q >= 0) & (q < K)
    pc = jnp.clip(p, 0, K - 1)
    qc = jnp.clip(q, 0, K - 1)

    # M[ci, h, w, oh, ow] = w_sum[ci, oh-h, ow-w] where valid, else 0
    m_full = w_sum[:, pc[:, None, :, None], qc[None, :, None, :]]       # (Cin, H, W, OH, OW)
    mask = (p_ok[:, None, :, None] & q_ok[None, :, None, :])[None]
    M = jnp.where(mask, m_full, 0.0).reshape(Cin * H * W, OH * OW)
    b_sum = jnp.sum(b).reshape(1).astype(jnp.float32)
    return M, b_sum


@functools.partial(jax.jit, static_argnames=("OH", "OW"))
def generator_forward(x, M, b_sum, *, OH, OW):
    """x: (N, Cin, H, W) f32; M: (Cin*H*W, OH*OW) f32; b_sum: (1,) f32.
    Returns (N, 1, OH, OW) f32 = clamp(sum_channels(ConvTranspose2d(x)), 0, 1)."""
    N = x.shape[0]
    D_in, D_out = M.shape
    x_flat = x.reshape(N, D_in).astype(jnp.float32)

    # Batch tile: full batch when tiny, otherwise a sublane-aligned block of 8 rows
    # (keeps per-step VMEM bounded and lets the "parallel" axis shard across TCs).
    NB = N if N <= 8 else 8
    grid = (pl.cdiv(N, NB),)

    out = pl.pallas_call(
        _generator_kernel,
        out_shape=jax.ShapeDtypeStruct((N, D_out), jnp.float32),
        grid=grid,
        in_specs=[
            pl.BlockSpec((NB, D_in), lambda i: (i, 0)),            # x batch tile
            pl.BlockSpec((D_in, D_out), lambda i: (0, 0)),         # dense map (resident)
            pl.BlockSpec(memory_space=pltpu.MemorySpace.SMEM),     # folded bias scalar
        ],
        out_specs=pl.BlockSpec((NB, D_out), lambda i: (i, 0)),     # lane-dense (multiple of 128)
        compiler_params=pltpu.CompilerParams(
            dimension_semantics=("parallel",)),
    )(x_flat, M, b_sum)

    return out.reshape(N, 1, OH, OW)


def reference_forward(x, w, b):
    """Pure-JAX reference using the direct scatter-add definition of ConvTranspose2d."""
    N, Cin, H, W = x.shape
    _, Cout, K, _ = w.shape
    OH, OW = H + K - 1, W + K - 1
    out = jnp.zeros((N, Cout, OH, OW), jnp.float32)
    for p in range(K):
        for q in range(K):
            out = out.at[:, :, p:p + H, q:q + W].add(
                jnp.einsum('nchw,cd->ndhw', x, w[:, :, p, q]))
    out = out + b[None, :, None, None]
    out = jnp.sum(out, axis=1, keepdims=True)
    return jnp.clip(out, 0.0, 1.0)


if __name__ == "__main__":
    # Generator(least_size=8, max_size=32, size_step_ratio=2):
    #   one layer ConvTranspose2d(1, 2, kernel_size=8*(2-1)+1=9, stride=1)
    least_size = 8
    ratio = 2
    batch = 2
    c_in, c_out = 1, 2
    K = least_size * (ratio - 1) + 1  # 9

    key = jax.random.PRNGKey(0)
    kx, kw, kb = jax.random.split(key, 3)
    x = jax.random.uniform(kx, (batch, c_in, least_size, least_size), jnp.float32)
    w = 0.02 * jax.random.normal(kw, (c_in, c_out, K, K), jnp.float32)
    b = 0.05 * jax.random.normal(kb, (c_out,), jnp.float32)

    OH = OW = least_size + K - 1  # = least_size * ratio = 16

    # Fold weights once (per weight update), outside the per-call forward path.
    M, b_sum = build_generator_params(w, b, least_size, least_size)

    out = generator_forward(x, M, b_sum, OH=OH, OW=OW)
    out = jax.block_until_ready(out)

    ref = reference_forward(x, w, b)
    assert out.shape == (batch, 1, least_size * ratio, least_size * ratio), out.shape
    max_err = float(jnp.max(jnp.abs(out - ref)))
    assert jnp.allclose(out, ref, atol=1e-4, rtol=1e-4), max_err

    print("KERNEL_OK")
</pallas_src>

<mosaic_0001>
module attributes {stable_mosaic.version = 11 : i64} {
  func.func @_generator_kernel(%arg0: i32, %arg1: memref<2x64xf32, #tpu.memory_space<vmem>>, %arg2: memref<64x256xf32, #tpu.memory_space<vmem>>, %arg3: memref<1xf32, #tpu.memory_space<smem>>, %arg4: memref<2x256xf32, #tpu.memory_space<vmem>>) attributes {dimension_semantics = [#tpu.dimension_semantics<parallel>], iteration_bounds = array<i64: 1>, scalar_prefetch = 0 : i64, scratch_operands = 0 : i64, tpu.core_type = #tpu.core_type<tc>, window_params = [{transform_indices = @transform_0, window_bounds = array<i64: 2, 64>}, {pipeline_mode = #tpu.pipeline_mode<synchronous>, transform_indices = @transform_1, window_bounds = array<i64: 64, 256>}, {transform_indices = @transform_2, window_bounds = array<i64: 1>}, {transform_indices = @transform_3, window_bounds = array<i64: 2, 256>}]} {
    %c0 = arith.constant 0 : index
    %c0_0 = arith.constant 0 : index
    %0 = vector.load %arg1[%c0, %c0_0] : memref<2x64xf32, #tpu.memory_space<vmem>>, vector<2x64xf32>
    %c0_1 = arith.constant 0 : index
    %c0_2 = arith.constant 0 : index
    %1 = vector.load %arg2[%c0_1, %c0_2] : memref<64x256xf32, #tpu.memory_space<vmem>>, vector<64x256xf32>
    %cst = arith.constant dense<0.000000e+00> : vector<2x256xf32>
    %2 = tpu.matmul %0, %1, %cst {dimension_numbers = #tpu.dot_dimension_numbers<[1], [0], [0], [1], [0, 0, 1, 1], [], []>, precision = #tpu.contract_precision<fp32>} : vector<2x64xf32>, vector<64x256xf32>, vector<2x256xf32> -> vector<2x256xf32>
    %c0_3 = arith.constant 0 : index
    %3 = memref.load %arg3[%c0_3] : memref<1xf32, #tpu.memory_space<smem>>
    %4 = vector.broadcast %3 : f32 to vector<2x256xf32>
    %5 = arith.addf %2, %4 : vector<2x256xf32>
    %cst_4 = arith.constant 0.000000e+00 : f32
    %cst_5 = arith.constant 1.000000e+00 : f32
    %6 = vector.broadcast %cst_4 : f32 to vector<2x256xf32>
    %7 = arith.maximumf %6, %5 : vector<2x256xf32>
    %8 = vector.broadcast %cst_5 : f32 to vector<2x256xf32>
    %9 = arith.minimumf %8, %7 : vector<2x256xf32>
    %c0_6 = arith.constant 0 : index
    %c0_7 = arith.constant 0 : index
    %10 = vector.load %arg4[%c0_6, %c0_7] : memref<2x256xf32, #tpu.memory_space<vmem>>, vector<2x256xf32>
    tpu.vector_store %arg4[%c0_6, %c0_7], %9 {strides = array<i32>} : memref<2x256xf32, #tpu.memory_space<vmem>>, vector<2x256xf32>,
    return
  }
  func.func @transform_0(%arg0: i32) -> (i32, i32) {
    %c0_i32 = arith.constant 0 : i32
    %c0_i32_0 = arith.constant 0 : i32
    return %arg0, %c0_i32 : i32, i32
  }
  func.func @transform_1(%arg0: i32) -> (i32, i32) {
    %c0_i32 = arith.constant 0 : i32
    %c0_i32_0 = arith.constant 0 : i32
    %c0_i32_1 = arith.constant 0 : i32
    return %c0_i32, %c0_i32_0 : i32, i32
  }
  func.func @transform_2(%arg0: i32) -> i32 {
    %c0_i32 = arith.constant 0 : i32
    %c0_i32_0 = arith.constant 0 : i32
    return %c0_i32 : i32
  }
  func.func @transform_3(%arg0: i32) -> (i32, i32) {
    %c0_i32 = arith.constant 0 : i32
    %c0_i32_0 = arith.constant 0 : i32
    return %arg0, %c0_i32 : i32, i32
  }
}

</mosaic_0001>

<bundles_post_ra>
// kernel: generator_forward.1
= control target key start
LH: loop header
LB: loop body
LE: loop exit
PB: predicated region body
PF: predicated region fallthrough
CT: control target
= control target key end

     0   :  { %9 = vsyncpa [#allocation4], 0  ;;  %s573_s15 = smov [#allocation3]   ;;  %s574_s17 = smov 256   ;;  %s865_s0 = inlined_call_operand.vmem [shape: f32[2,64], index: 0, kind: input, shape index: {}]   ;;  %s866_s1 = inlined_call_operand.hbm [shape: f32[64,256], index: 1, kind: input, shape index: {}]   ;;  %s867_s2 = inlined_call_operand.<no memory space> [shape: f32[1], index: 2, kind: input, shape index: {}]   ;;  %s868_s3 = inlined_call_operand.vmem [shape: f32[2,256], index: 3, kind: output, shape index: {}]  }
   0x1   :  { %s16_s14 = sshll.u32 %s866_s1, 4  ;;  %s18_s16 = sshll.u32 %s573_s15, 4  ;;  %s17_s14 = int_to_ptr.hbm [resolvable:$true] %s16_s14  ;;  %s19_s16 = int_to_ptr.vmem [resolvable:$true] %s18_s16 }
   0x2   :  { %s575_s18 = smov 16  }
   0x3   :  { %24 = dma.hbm_to_vmem [thread:$0]  %s17_s14, 2048, %s19_s16, [#allocation4], %s574_s17, %s574_s17, %s575_s18  }
   0x4   :  { %571 = dma.done.wait [#allocation4], 2048  }
   0x5   :  { %572 = vsyncadd [#allocation4], 4294965248  ;;  %v46_v0 = vld [vmem:[#allocation3 + $0x70] sm:$0xff]  ;;  %v44_v1 = vld [vmem:[#allocation3 + $0x60] sm:$0xff]  ;;  %vm50_vm0 = vcmask 523264   ;;  %vm535_vm1 = vcmask 1041408  }
   0x6   :  { %v42_v2 = vld [vmem:[#allocation3 + $0x50] sm:$0xff]  ;;  %v599_v3 = vand.u32 4294901760, %v46_v0  ;;  %v601_v4 = vand.u32 4294901760, %v44_v1  ;;  %v40_v6 = vld [vmem:[#allocation3 + $0x40] sm:$0xff]  ;;  %v47_v22 = vld [vmem:[#allocation3 + $0x78] sm:$0xff] }
   0x7   :  { %v603_v5 = vand.u32 4294901760, %v42_v2  ;;  %v38_v7 = vld [vmem:[#allocation3 + $0x30] sm:$0xff]  ;;  %v36_v8 = vld [vmem:[#allocation3 + $0x20] sm:$0xff]  ;;  %v605_v9 = vand.u32 4294901760, %v40_v6  ;;  %v45_v30 = vld [vmem:[#allocation3 + $0x68] sm:$0xff]  ;;  %v658_v34 = vand.u32 4294901760, %v47_v22 }
   0x8   :  { %v607_v10 = vand.u32 4294901760, %v38_v7  ;;  %v609_v11 = vand.u32 4294901760, %v36_v8  ;;  %v34_v12 = vld [vmem:[#allocation3 + $0x10] sm:$0xff]  ;;  %v32_v13 = vld [vmem:[#allocation3] sm:$0xff]  ;;  %v612_v14 = vsub.f32 %v46_v0, %v599_v3  ;;  %63 = vmatpush.msra.mxu0 %v599_v3  ;;  %v616_v15 = vsub.f32 %v44_v1, %v601_v4  ;;  %195 = vmatpush.msra.mxu3 %v599_v3  ;;  %v43_v37 = vld [vmem:[#allocation3 + $0x58] sm:$0xff] }
   0x9   :  { %v620_v16 = vsub.f32 %v42_v2, %v603_v5  ;;  %v622_v17 = vand.u32 4294901760, %v34_v12  ;;  %v625_v18 = vsub.f32 %v40_v6, %v605_v9  ;;  %v633_v21 = vand.u32 4294901760, %v32_v13  ;;  %v41_v42 = vld [vmem:[#allocation3 + $0x48] sm:$0xff]  ;;  %v39_v43 = vld [vmem:[#allocation3 + $0x38] sm:$0xff]  ;;  %v31_v61 = vld [vmem:[%s865_s0] sm:$0x3] }
   0xa   :  { %v628_v19 = vsub.f32 %v38_v7, %v607_v10  ;;  %v631_v20 = vsub.f32 %v36_v8, %v609_v11  ;;  %158 = vmatpush.msra.mxu2 %v612_v14  ;;  %65 = vmatpush.msra.mxu0 %v601_v4  ;;  %v97_v23 = vand.u32 4294901760, %v612_v14  ;;  %v103_v24 = vand.u32 4294901760, %v616_v15  ;;  %v37_v44 = vld [vmem:[#allocation3 + $0x28] sm:$0xff]  ;;  %v35_v52 = vld [vmem:[#allocation3 + $0x18] sm:$0xff] }
   0xb   :  { %v109_v25 = vand.u32 4294901760, %v620_v16  ;;  %197 = vmatpush.msra.mxu3 %v601_v4  ;;  %v115_v26 = vand.u32 4294901760, %v625_v18  ;;  %v644_v28 = vsub.f32 %v34_v12, %v622_v17  ;;  %v665_v36 = vsub.f32 %v32_v13, %v633_v21  ;;  %v33_v12 = vld [vmem:[#allocation3 + $0x8] sm:$0xff] }
   0xc   :  { %v121_v27 = vand.u32 4294901760, %v628_v19  ;;  %v127_v29 = vand.u32 4294901760, %v631_v20  ;;  %161 = vmatpush.msra.mxu2 %v616_v15  ;;  %v98_v31 = vsub.f32 %v612_v14, %v97_v23  ;;  %67 = vmatpush.msra.mxu0 %v603_v5  ;;  %v104_v32 = vsub.f32 %v616_v15, %v103_v24 }
   0xd   :  { %v110_v33 = vsub.f32 %v620_v16, %v109_v25  ;;  %199 = vmatpush.msra.mxu3 %v603_v5  ;;  %v116_v35 = vsub.f32 %v625_v18, %v115_v26  ;;  %v672_v41 = vand.u32 4294901760, %v45_v30  ;;  %v133_v47 = vand.u32 4294901760, %v644_v28 }
   0xe   :  { %v99_v38 = vand.u32 4294901760, %v98_v31  ;;  %164 = vmatpush.msra.mxu2 %v620_v16  ;;  %v105_v39 = vand.u32 4294901760, %v104_v32  ;;  %69 = vmatpush.msra.mxu0 %v605_v9  ;;  %v122_v40 = vsub.f32 %v628_v19, %v121_v27  ;;  %v128_v46 = vsub.f32 %v631_v20, %v127_v29 }
   0xf   :  { %v111_v45 = vand.u32 4294901760, %v110_v33  ;;  %201 = vmatpush.msra.mxu3 %v605_v9  ;;  %v117_v48 = vand.u32 4294901760, %v116_v35  ;;  %v681_v49 = vsub.f32 %v47_v22, %v658_v34  ;;  %v683_v50 = vand.u32 4294901760, %v43_v37 }
  0x10   :  { %100 = vmatpush.msra.mxu1 %v99_v38  ;;  %167 = vmatpush.msra.mxu2 %v625_v18  ;;  %v686_v51 = vsub.f32 %v45_v30, %v672_v41  ;;  %v139_v53 = vand.u32 4294901760, %v665_v36  ;;  %v691_v54 = vand.u32 4294901760, %v41_v42  ;;  %v693_v55 = vand.u32 4294901760, %v39_v43 }
  0x11   :  { %71 = vmatpush.msra.mxu0 %v607_v10  ;;  %203 = vmatpush.msra.mxu3 %v607_v10  ;;  %v695_v56 = vand.u32 4294901760, %v37_v44  ;;  %v123_v57 = vand.u32 4294901760, %v122_v40  ;;  %v334_v58 = vand.u32 4294901760, %v681_v49  ;;  %v701_v60 = vsub.f32 %v43_v37, %v683_v50 }
  0x12   :  { %106 = vmatpush.msra.mxu1 %v105_v39  ;;  %170 = vmatpush.msra.mxu2 %v628_v19  ;;  %v340_v59 = vand.u32 4294901760, %v686_v51  ;;  %v134_v62 = vsub.f32 %v644_v28, %v133_v47  ;;  %v712_v63 = vsub.f32 %v41_v42, %v691_v54  ;;  %v715_v0 = vsub.f32 %v39_v43, %v693_v55 }
  0x13   :  { %73 = vmatpush.msra.mxu0 %v609_v11  ;;  %205 = vmatpush.msra.mxu3 %v609_v11  ;;  %v717_v1 = vand.u32 4294901760, %v35_v52  ;;  %v335_v2 = vsub.f32 %v681_v49, %v334_v58  ;;  %v346_v7 = vand.u32 4294901760, %v701_v60  ;;  %v728_v8 = vsub.f32 %v37_v44, %v695_v56 }
  0x14   :  { %112 = vmatpush.msra.mxu1 %v111_v45  ;;  %173 = vmatpush.msra.mxu2 %v631_v20  ;;  %v341_v6 = vsub.f32 %v686_v51, %v340_v59  ;;  %v129_v13 = vand.u32 4294901760, %v128_v46  ;;  %v140_v22 = vsub.f32 %v665_v36, %v139_v53  ;;  %v352_v30 = vand.u32 4294901760, %v712_v63 }
  0x15   :  { %75 = vmatpush.msra.mxu0 %v622_v17  ;;  %207 = vmatpush.msra.mxu3 %v622_v17  ;;  %v52_v31 = vsel %vm50_vm0, %v31_v61, 0  ;;  %v336_v32 = vand.u32 4294901760, %v335_v2  ;;  %v347_v33 = vsub.f32 %v701_v60, %v346_v7  ;;  %v358_v35 = vand.u32 4294901760, %v715_v0 }
  0x16   :  { %118 = vmatpush.msra.mxu1 %v117_v48  ;;  %176 = vmatpush.msra.mxu2 %v644_v28  ;;  %v742_v37 = vand.u32 4294901760, %v52_v31  ;;  %v135_v38 = vand.u32 4294901760, %v134_v62  ;;  %v746_v39 = vand.u32 4294901760, %v33_v12  ;;  %v342_v40 = vand.u32 4294901760, %v341_v6 }
  0x17   :  { %77 = vmatpush.msra.mxu0 %v633_v21  ;;  %209 = vmatpush.msra.mxu3 %v633_v21  ;;  %v353_v42 = vsub.f32 %v712_v63, %v352_v30  ;;  %v364_v43 = vand.u32 4294901760, %v728_v8  ;;  %v754_v44 = vsub.f32 %v35_v52, %v717_v1  ;;  %v141_v46 = vand.u32 4294901760, %v140_v22 }
  0x18   :  { %124 = vmatpush.msra.mxu1 %v123_v57  ;;  %179 = vmatpush.msra.mxu2 %v665_v36  ;;  %v760_v45 = vsub.f32 %v52_v31, %v742_v37  ;;  %v348_v48 = vand.u32 4294901760, %v347_v33  ;;  %v359_v57 = vsub.f32 %v715_v0, %v358_v35  ;;  %v769_v52 = vsub.f32 %v33_v12, %v746_v39 }
  0x19   :  { %228 = vmatpush.msrb.mxu0 %v97_v23  ;;  %337 = vmatpush.msrb.mxu3 %v336_v32  ;;  %v354_v14 = vand.u32 4294901760, %v353_v42  ;;  %v365_v23 = vsub.f32 %v728_v8, %v364_v43  ;;  %v370_v61 = vand.u32 4294901760, %v754_v44 }
  0x1a   :  { %300 = vmatpush.msrb.mxu2 %v658_v34  ;;  %130 = vmatpush.msra.mxu1 %v129_v13  ;;  %v779_v15 = vand.u32 4294901760, %v760_v45  ;;  %v376_v62 = vand.u32 4294901760, %v769_v52 }
  0x1b   :  { %232 = vmatpush.msrb.mxu0 %v103_v24  ;;  %343 = vmatpush.msrb.mxu3 %v342_v40  ;;  %v360_v24 = vand.u32 4294901760, %v359_v57  ;;  %v366_v2 = vand.u32 4294901760, %v365_v23  ;;  %v371_v16 = vsub.f32 %v754_v44, %v370_v61 }
  0x1c   :  { %302 = vmatpush.msrb.mxu2 %v672_v41  ;;  %136 = vmatpush.msra.mxu1 %v135_v38  ;;  %v377_v18 = vsub.f32 %v769_v52, %v376_v62 }
  0x1d   :  { %236 = vmatpush.msrb.mxu0 %v109_v25  ;;  %349 = vmatpush.msrb.mxu3 %v348_v48 }
  0x1e   :  { %304 = vmatpush.msrb.mxu2 %v683_v50  ;;  %142 = vmatpush.msra.mxu1 %v141_v46 }
  0x1f   :  { %240 = vmatpush.msrb.mxu0 %v115_v26  ;;  %355 = vmatpush.msrb.mxu3 %v354_v14 }
  0x20   :  { %271 = vmatpush.msrb.mxu1 %v599_v3  ;;  %306 = vmatpush.msrb.mxu2 %v691_v54  ;;  %v81_v3 = vsub.f32 %v760_v45, %v779_v15 }
  0x21   :  { %244 = vmatpush.msrb.mxu0 %v121_v27  ;;  %361 = vmatpush.msrb.mxu3 %v360_v24 }
  0x22   :  { %273 = vmatpush.msrb.mxu1 %v601_v4  ;;  %308 = vmatpush.msrb.mxu2 %v693_v55  ;;  %v372_v4 = vand.u32 4294901760, %v371_v16  ;;  %v82_v25 = vand.u32 4294901760, %v81_v3 }
  0x23   :  { %248 = vmatpush.msrb.mxu0 %v127_v29  ;;  %367 = vmatpush.msrb.mxu3 %v366_v2 }
  0x24   :  { %275 = vmatpush.msrb.mxu1 %v603_v5  ;;  %310 = vmatpush.msrb.mxu2 %v695_v56  ;;  %v378_v5 = vand.u32 4294901760, %v377_v18 }
  0x25   :  { %182 = vmatmul.f32.vlgmr.msra.gmra.mxu2 %v760_v45  ;;  %252 = vmatpush.msrb.mxu0 %v133_v47 }
  0x26   :  { %277 = vmatpush.msrb.mxu1 %v605_v9  ;;  %312 = vmatpush.msrb.mxu2 %v717_v1 }
  0x27   :  { %373 = vmatpush.msrb.mxu3 %v372_v4  ;;  %83 = vmatmul.f32.vlgmr.msra.gmra.mxu0 %v82_v25 }
  0x28   :  { %279 = vmatpush.msrb.mxu1 %v607_v10  ;;  %314 = vmatpush.msrb.mxu2 %v746_v39  ;;  %v49_v10 = vstv %s867_s2 }
  0x29   :  { %213 = vmatmul.f32.vlgmr.msra.gmra.mxu3 %v779_v15  ;;  %256 = vmatpush.msrb.mxu0 %v139_v53 }
  0x2a   :  { %465 = vmatpush.msra.mxu2 %v334_v58  ;;  %281 = vmatpush.msrb.mxu1 %v609_v11 }
  0x2b   :  { %379 = vmatpush.msrb.mxu3 %v378_v5  ;;  %395 = vmatpush.msra.mxu0 %v681_v49 }
  0x2c   :  { %283 = vmatpush.msrb.mxu1 %v622_v17  ;;  %469 = vmatpush.msra.mxu2 %v340_v59 }
  0x2d   :  { %508 = vmatpush.msra.mxu3 %v658_v34  ;;  %144 = vmatmul.f32.vlgmr.msra.gmra.mxu1 %v742_v37 }
  0x2e   :  { %285 = vmatpush.msrb.mxu1 %v633_v21  ;;  %398 = vmatpush.msra.mxu0 %v686_v51 }
  0x2f   :  { %473 = vmatpush.msra.mxu2 %v346_v7  ;;  %510 = vmatpush.msra.mxu3 %v672_v41 }
  0x30   :  { %432 = vmatpush.msra.mxu1 %v658_v34  ;;  %401 = vmatpush.msra.mxu0 %v701_v60 }
  0x31   :  { %477 = vmatpush.msra.mxu2 %v352_v30  ;;  %512 = vmatpush.msra.mxu3 %v683_v50 }
  0x32   :  { %434 = vmatpush.msra.mxu1 %v672_v41  ;;  %320 = vmatmul.f32.vlgmr.msrb.gmra.mxu2 %v82_v25 }
  0x33   :  { %404 = vmatpush.msra.mxu0 %v712_v63  ;;  %481 = vmatpush.msra.mxu2 %v358_v35 }
  0x34   :  { %436 = vmatpush.msra.mxu1 %v683_v50  ;;  %514 = vmatpush.msra.mxu3 %v691_v54 }
  0x35   :  { %258 = vmatmul.f32.vlgmr.msrb.gmra.mxu0 %v742_v37  ;;  %381 = vmatmul.f32.vlgmr.msrb.gmra.mxu3 %v742_v37 }
  0x36   :  { %407 = vmatpush.msra.mxu0 %v715_v0  ;;  %438 = vmatpush.msra.mxu1 %v691_v54 }
  0x37   :  { %485 = vmatpush.msra.mxu2 %v364_v43  ;;  %516 = vmatpush.msra.mxu3 %v693_v55 }
  0x38   :  { %287 = vmatmul.f32.vlgmr.msrb.gmra.mxu1 %v742_v37  ;;  %410 = vmatpush.msra.mxu0 %v728_v8 }
  0x39   :  { %440 = vmatpush.msra.mxu1 %v693_v55  ;;  %489 = vmatpush.msra.mxu2 %v370_v61 }
  0x3a   :  { %518 = vmatpush.msra.mxu3 %v695_v56  ;;  %413 = vmatpush.msra.mxu0 %v754_v44 }
  0x3b   :  { %442 = vmatpush.msra.mxu1 %v695_v56  ;;  %493 = vmatpush.msra.mxu2 %v376_v62 }
  0x3c   :  { %520 = vmatpush.msra.mxu3 %v717_v1  ;;  %495 = vmatmul.f32.vlgmr.msra.gmra.mxu2 %v742_v37 }
  0x3d   :  { %416 = vmatpush.msra.mxu0 %v769_v52  ;;  %444 = vmatpush.msra.mxu1 %v717_v1 }
  0x3e   :  { %522 = vmatpush.msra.mxu3 %v746_v39  ;;  %419 = vmatmul.f32.vlgmr.msra.gmra.mxu0 %v760_v45 }
  0x3f   :  { %524 = vmatmul.f32.vlgmr.msra.gmra.mxu3 %v742_v37  ;;  %446 = vmatpush.msra.mxu1 %v746_v39 }
  0x40   :  { %450 = vmatmul.f32.vlgmr.msra.gmra.mxu1 %v779_v15 }
  0xa4   :  { %v84_v9 = vpop.f32.mrf.mxu0 }
  0xa5   :  { %v85_v19 = vadd.f32 %v84_v9, %v49_v10 }
  0xa8   :  { %v183_v17 = vpop.f32.mrf.mxu2 }
  0xaa   :  { %v145_v11 = vpop.f32.mrf.mxu1 }
  0xab   :  { %v146_v21 = vadd.f32 %v145_v11, %v85_v19 }
  0xac   :  { %v214_v20 = vpop.f32.mrf.mxu3 }
  0xad   :  { %v184_v27 = vadd.f32 %v183_v17, %v146_v21 }
  0xaf   :  { %v215_v41 = vadd.f32 %v214_v20, %v184_v27 }
  0xb2   :  { %v259_v26 = vpop.f32.mrf.mxu0 }
  0xb3   :  { %v260_v51 = vadd.f32 %v259_v26, %v215_v41 }
  0xb5   :  { %v288_v28 = vpop.f32.mrf.mxu1  ;;  %v321_v29 = vpop.f32.mrf.mxu2 }
  0xb6   :  { %v322_v34 = vadd.f32 %v321_v29, %v49_v10  ;;  %v289_v58 = vadd.f32 %v288_v28, %v260_v51 }
  0xb8   :  { %v382_v36 = vpop.f32.mrf.mxu3  ;;  %v528_v63 = vmax.f32 %v289_v58, 0.0 }
  0xb9   :  { %v383_v47 = vadd.f32 %v382_v36, %v322_v34 }
  0xba   :  { %v530_v6 = vmin.f32 %v528_v63, 1.0 }
  0xbb   :  { %v420_v49 = vpop.f32.mrf.mxu0 }
  0xbc   :  { %v421_v50 = vadd.f32 %v420_v49, %v383_v47 }
  0xbd   :  { %v451_v53 = vpop.f32.mrf.mxu1 }
  0xbe   :  { %v452_v54 = vadd.f32 %v451_v53, %v421_v50 }
  0xbf   :  { %v496_v55 = vpop.f32.mrf.mxu2 }
  0xc0   :  { %v497_v56 = vadd.f32 %v496_v55, %v452_v54 }
  0xc2   :  { %v525_v59 = vpop.f32.mrf.mxu3 }
  0xc3   :  { %v526_v60 = vadd.f32 %v525_v59, %v497_v56 }
  0xc5   :  { %v529_v0 = vmax.f32 %v526_v60, 0.0 }
  0xc7   :  { %v531_v1 = vmin.f32 %v529_v0, 1.0 }
  0xc9   :  { %v534_v7 = vrot.slane %v531_v1, 6 }
  0xcb   :  { %v536_v8 = vsel %vm535_vm1, %v530_v6, %v534_v7 }
  0xcc   :  { %538 = vst [vmem:[%s868_s3] sm:$0xf] %v536_v8 }
  0xcd   :  { %543 = vsyncpa [#allocation4], 1 }

</bundles_post_ra>
